<compile_context>
chip_gen: v6e
topology: v6e:2x2x1
jax: 0.10.0
libtpu: 0.0.40
codegen_flags: <defaults>
</compile_context>

<pallas_src>
import functools

import jax
import jax.numpy as jnp
from jax.experimental import pallas as pl
from jax.experimental.pallas import tpu as pltpu


_LANE = 128


# --------------------------- fused (small HW) path ---------------------------

def _caf_fused_kernel(x_ref, wa_ref, wm_ref, b_ref, o_ref, *, hw_true, hw_pad):
    """One batch element per grid step; full (C, HW_pad) block resident."""
    x = x_ref[0]                                                 # (C, HW_pad)

    # Pooling: mean / max over the flattened spatial axis.
    avg = jnp.sum(x, axis=-1, keepdims=True) * (1.0 / hw_true)   # (C, 1)
    if hw_pad != hw_true:
        # Padded lanes are zero-filled by the wrapper; mask them for the max.
        lane = jax.lax.broadcasted_iota(jnp.int32, x.shape, 1)
        xm = jnp.where(lane < hw_true, x, -jnp.inf)
    else:
        xm = x
    mx = jnp.max(xm, axis=-1, keepdims=True)                     # (C, 1)

    # 1x1 conv with eval-mode BN folded in; split weights avoid the sublane
    # concatenate of [avg; max].
    y = (jnp.dot(wa_ref[...], avg, preferred_element_type=jnp.float32)
         + jnp.dot(wm_ref[...], mx, preferred_element_type=jnp.float32)
         + b_ref[...])                                           # (C, 1)

    # Dropout(p=0.1) is identity in eval mode.
    # attn[b] = y^T @ x -> (1, HW);  out = attn * x.
    attn = jnp.sum(y * x, axis=0, keepdims=True)                 # (1, HW_pad)
    o_ref[0] = attn * x


# ------------------------ tiled (large HW) path -------------------------------

def _caf_pool_kernel(x_ref, wa_ref, wm_ref, b_ref, y_ref, sum_sc, max_sc,
                     *, hw_true, hw_pad):
    """Phase 1: accumulate spatial sum/max per channel, emit y on last tile."""
    t = pl.program_id(1)
    x = x_ref[0]                                                 # (C, T)
    tsz = x.shape[-1]

    @pl.when(t == 0)
    def _():
        sum_sc[...] = jnp.zeros_like(sum_sc)
        max_sc[...] = jnp.full_like(max_sc, -jnp.inf)

    sum_sc[...] += jnp.sum(x, axis=-1, keepdims=True)
    if hw_pad != hw_true:
        lane = jax.lax.broadcasted_iota(jnp.int32, x.shape, 1) + t * tsz
        xm = jnp.where(lane < hw_true, x, -jnp.inf)
    else:
        xm = x
    max_sc[...] = jnp.maximum(max_sc[...], jnp.max(xm, axis=-1, keepdims=True))

    @pl.when(t == pl.num_programs(1) - 1)
    def _():
        avg = sum_sc[...] * (1.0 / hw_true)
        y_ref[0] = (jnp.dot(wa_ref[...], avg,
                            preferred_element_type=jnp.float32)
                    + jnp.dot(wm_ref[...], max_sc[...],
                              preferred_element_type=jnp.float32)
                    + b_ref[...])                                # (C, 1)


def _caf_apply_kernel(y_ref, x_ref, o_ref):
    """Phase 2: out = (y . x) * x on one (C, T) spatial tile."""
    x = x_ref[0]                                                 # (C, T)
    y = y_ref[0]                                                 # (C, 1)
    attn = jnp.sum(y * x, axis=0, keepdims=True)                 # (1, T)
    o_ref[0] = attn * x


# --------------------------------- wrapper ------------------------------------

def _vmem_limit(bytes_estimate):
    # Generous margin; floor at 16 MiB (safe everywhere), cap at 48 MiB so the
    # request still fits v7x's 64 MiB physical VMEM with headroom.
    return int(min(max(bytes_estimate + (4 << 20), 16 << 20), 48 << 20))


def channel_attention_fusion(x, w, b, gamma, beta, running_mean, running_var,
                             *, spatial_tile=None):
    """channelAttention_fusion forward (eval mode).

    x: (B, C, H, W) f32; w: (C, 2C, 1, 1); b/gamma/beta/mean/var: (C,).
    spatial_tile: force the tiled two-phase path with this lane-tile size.
    """
    B, C, H, W = x.shape
    HW = H * W
    f32 = jnp.float32

    # Fold the eval-mode BatchNorm into the 1x1 conv weight/bias.
    scale = gamma.astype(f32) * jax.lax.rsqrt(running_var.astype(f32) + 1e-5)
    w2 = w.reshape(C, 2 * C).astype(f32) * scale[:, None]
    b2 = (b.astype(f32) - running_mean.astype(f32)) * scale + beta.astype(f32)
    wa = w2[:, :C]                  # applies to the avg-pooled vector
    wm = w2[:, C:]                  # applies to the max-pooled vector
    bcol = b2.reshape(C, 1)

    hw_pad_min = pl.cdiv(HW, _LANE) * _LANE
    blk_bytes = C * hw_pad_min * 4
    param_bytes = 2 * C * C * 4 + C * 4
    # in + out double-buffered plus ~2 block-sized temporaries in the body.
    fused_est = 6 * blk_bytes + param_bytes

    use_tiled = (spatial_tile is not None) or (fused_est > (32 << 20))

    if not use_tiled:
        hw_pad = hw_pad_min
        xf = x.reshape(B, C, HW).astype(f32)
        if hw_pad != HW:
            xf = jnp.pad(xf, ((0, 0), (0, 0), (0, hw_pad - HW)))

        kernel = functools.partial(_caf_fused_kernel, hw_true=HW, hw_pad=hw_pad)
        wspec = pl.BlockSpec((C, C), lambda i: (0, 0))
        out = pl.pallas_call(
            kernel,
            out_shape=jax.ShapeDtypeStruct((B, C, hw_pad), f32),
            grid_spec=pltpu.PrefetchScalarGridSpec(
                num_scalar_prefetch=0,
                grid=(B,),
                in_specs=[
                    pl.BlockSpec((1, C, hw_pad), lambda i: (i, 0, 0)),
                    wspec, wspec,
                    pl.BlockSpec((C, 1), lambda i: (0, 0)),
                ],
                out_specs=pl.BlockSpec((1, C, hw_pad), lambda i: (i, 0, 0)),
            ),
            compiler_params=pltpu.CompilerParams(
                dimension_semantics=("parallel",),
                vmem_limit_bytes=_vmem_limit(fused_est)),
        )(xf, wa, wm, bcol)
    else:
        # Spatial tile: multiple of 128 lanes, ~2 MiB of f32 per x block.
        if spatial_tile is None:
            t_lanes = max(_LANE * 4, ((2 << 20) // (4 * C)) // _LANE * _LANE)
        else:
            t_lanes = int(spatial_tile)
        t_lanes = max(_LANE, (t_lanes // _LANE) * _LANE)
        t_lanes = min(t_lanes, hw_pad_min)
        num_tiles = pl.cdiv(HW, t_lanes)
        hw_pad = num_tiles * t_lanes

        xf = x.reshape(B, C, HW).astype(f32)
        if hw_pad != HW:
            xf = jnp.pad(xf, ((0, 0), (0, 0), (0, hw_pad - HW)))

        wspec2 = pl.BlockSpec((C, C), lambda i, j: (0, 0))

        # Phase 1: pooled stats + conv(+folded BN) -> y of shape (B, C, 1).
        pool_kernel = functools.partial(_caf_pool_kernel,
                                        hw_true=HW, hw_pad=hw_pad)
        pool_est = 2 * C * t_lanes * 4 + param_bytes
        y = pl.pallas_call(
            pool_kernel,
            out_shape=jax.ShapeDtypeStruct((B, C, 1), f32),
            grid_spec=pltpu.PrefetchScalarGridSpec(
                num_scalar_prefetch=0,
                grid=(B, num_tiles),
                in_specs=[
                    pl.BlockSpec((1, C, t_lanes), lambda i, j: (i, 0, j)),
                    wspec2, wspec2,
                    pl.BlockSpec((C, 1), lambda i, j: (0, 0)),
                ],
                out_specs=pl.BlockSpec((1, C, 1), lambda i, j: (i, 0, 0)),
                scratch_shapes=[pltpu.VMEM((C, 1), f32),
                                pltpu.VMEM((C, 1), f32)],
            ),
            compiler_params=pltpu.CompilerParams(
                dimension_semantics=("parallel", "arbitrary"),
                vmem_limit_bytes=_vmem_limit(pool_est)),
        )(xf, wa, wm, bcol)

        # Phase 2: out = (y . x) * x, fully parallel grid (v7x megacore).
        apply_est = 4 * C * t_lanes * 4 + C * 4
        out = pl.pallas_call(
            _caf_apply_kernel,
            out_shape=jax.ShapeDtypeStruct((B, C, hw_pad), f32),
            grid_spec=pltpu.PrefetchScalarGridSpec(
                num_scalar_prefetch=0,
                grid=(B, num_tiles),
                in_specs=[
                    pl.BlockSpec((1, C, 1), lambda i, j: (i, 0, 0)),
                    pl.BlockSpec((1, C, t_lanes), lambda i, j: (i, 0, j)),
                ],
                out_specs=pl.BlockSpec((1, C, t_lanes), lambda i, j: (i, 0, j)),
            ),
            compiler_params=pltpu.CompilerParams(
                dimension_semantics=("parallel", "parallel"),
                vmem_limit_bytes=_vmem_limit(apply_est)),
        )(y, xf)

    if hw_pad != HW:
        out = out[:, :, :HW]
    return out.reshape(B, C, H, W)


# -------------------------------- reference -----------------------------------

def _reference(x, w, b, gamma, beta, running_mean, running_var):
    """Pure-JAX reference following the PyTorch forward exactly (eval mode)."""
    B, C, H, W = x.shape
    avg = jnp.mean(x, axis=(2, 3), keepdims=True)                 # (B,C,1,1)
    mx = jnp.max(x, axis=(2, 3), keepdims=True)                   # (B,C,1,1)
    im = jnp.concatenate([avg, mx], axis=1)                       # (B,2C,1,1)
    im = jnp.einsum("ck,bk->bc", w.reshape(C, 2 * C), im[..., 0, 0]) + b
    im = (im - running_mean) * jax.lax.rsqrt(running_var + 1e-5) * gamma + beta
    im = im.reshape(B, 1, C)
    im2 = x.reshape(B, C, H * W)
    out = jnp.einsum("bic,bcs->bis", im, im2).reshape(B, 1, H, W)
    return out * x


if __name__ == "__main__":
    B, C = 2, 4
    key = jax.random.PRNGKey(0)
    kw, kb, kx = jax.random.split(key, 3)

    # Conv2d(2C, C, 1) parameters: weight (C, 2C, 1, 1), bias (C,)
    fan_in = 2 * C
    bound_w = (3.0 / fan_in) ** 0.5
    w = jax.random.uniform(kw, (C, 2 * C, 1, 1), jnp.float32, -bound_w, bound_w)
    bound_b = 1.0 / (fan_in ** 0.5)
    b = jax.random.uniform(kb, (C,), jnp.float32, -bound_b, bound_b)

    # Non-trivial BatchNorm running stats to exercise the fold.
    gamma = jnp.full((C,), 1.1, jnp.float32)
    beta = jnp.full((C,), 0.05, jnp.float32)
    running_mean = jnp.full((C,), 0.02, jnp.float32)
    running_var = jnp.full((C,), 0.9, jnp.float32)

    # (H, W, forced spatial tile): exercises fused, tiled, and padded paths.
    configs = [(16, 16, None), (16, 16, 128), (12, 12, None), (12, 12, 128)]
    for (H, W, tile) in configs:
        kx, sub = jax.random.split(kx)
        x = jax.random.normal(sub, (B, C, H, W), dtype=jnp.float32)

        out = channel_attention_fusion(x, w, b, gamma, beta,
                                       running_mean, running_var,
                                       spatial_tile=tile)
        out = jax.block_until_ready(out)

        ref = _reference(x, w, b, gamma, beta, running_mean, running_var)
        assert out.shape == (B, C, H, W)
        assert jnp.allclose(out, ref, atol=1e-4, rtol=1e-4), (
            f"mismatch vs reference for H={H}, W={W}, tile={tile}")

    print("KERNEL_OK")
</pallas_src>

<mosaic_0001>
module attributes {stable_mosaic.version = 11 : i64} {
  func.func @_caf_fused_kernel(%arg0: i32, %arg1: memref<1x4x256xf32, #tpu.memory_space<vmem>>, %arg2: memref<4x4xf32, #tpu.memory_space<vmem>>, %arg3: memref<4x4xf32, #tpu.memory_space<vmem>>, %arg4: memref<4x1xf32, #tpu.memory_space<vmem>>, %arg5: memref<1x4x256xf32, #tpu.memory_space<vmem>>) attributes {dimension_semantics = [#tpu.dimension_semantics<parallel>], iteration_bounds = array<i64: 2>, scalar_prefetch = 0 : i64, scratch_operands = 0 : i64, tpu.core_type = #tpu.core_type<tc>, window_params = [{transform_indices = @transform_0, window_bounds = array<i64: 1, 4, 256>}, {pipeline_mode = #tpu.pipeline_mode<synchronous>, transform_indices = @transform_1, window_bounds = array<i64: 4, 4>}, {pipeline_mode = #tpu.pipeline_mode<synchronous>, transform_indices = @transform_2, window_bounds = array<i64: 4, 4>}, {pipeline_mode = #tpu.pipeline_mode<synchronous>, transform_indices = @transform_3, window_bounds = array<i64: 4, 1>}, {transform_indices = @transform_4, window_bounds = array<i64: 1, 4, 256>}]} {
    %c0 = arith.constant 0 : index
    %c0_0 = arith.constant 0 : index
    %c0_1 = arith.constant 0 : index
    %0 = vector.load %arg1[%c0, %c0_0, %c0_1] : memref<1x4x256xf32, #tpu.memory_space<vmem>>, vector<1x4x256xf32>
    %1 = vector.shape_cast %0 : vector<1x4x256xf32> to vector<4x256xf32>
    %cst = arith.constant dense<0.000000e+00> : vector<4xf32>
    %2 = vector.multi_reduction <add>, %1, %cst [1] : vector<4x256xf32> to vector<4xf32>
    %3 = vector.shape_cast %2 : vector<4xf32> to vector<4x1xf32>
    %cst_2 = arith.constant 3.906250e-03 : f32
    %4 = vector.broadcast %cst_2 : f32 to vector<4x1xf32>
    %5 = arith.mulf %3, %4 : vector<4x1xf32>
    %cst_3 = arith.constant dense<0xFF800000> : vector<4xf32>
    %6 = vector.multi_reduction <maximumf>, %1, %cst_3 [1] : vector<4x256xf32> to vector<4xf32>
    %7 = vector.shape_cast %6 : vector<4xf32> to vector<4x1xf32>
    %c0_4 = arith.constant 0 : index
    %c0_5 = arith.constant 0 : index
    %8 = vector.load %arg2[%c0_4, %c0_5] : memref<4x4xf32, #tpu.memory_space<vmem>>, vector<4x4xf32>
    %cst_6 = arith.constant dense<0.000000e+00> : vector<4x1xf32>
    %9 = tpu.matmul %8, %5, %cst_6 {dimension_numbers = #tpu.dot_dimension_numbers<[1], [0], [0], [1], [0, 0, 1, 1], [], []>} : vector<4x4xf32>, vector<4x1xf32>, vector<4x1xf32> -> vector<4x1xf32>
    %c0_7 = arith.constant 0 : index
    %c0_8 = arith.constant 0 : index
    %10 = vector.load %arg3[%c0_7, %c0_8] : memref<4x4xf32, #tpu.memory_space<vmem>>, vector<4x4xf32>
    %cst_9 = arith.constant dense<0.000000e+00> : vector<4x1xf32>
    %11 = tpu.matmul %10, %7, %cst_9 {dimension_numbers = #tpu.dot_dimension_numbers<[1], [0], [0], [1], [0, 0, 1, 1], [], []>} : vector<4x4xf32>, vector<4x1xf32>, vector<4x1xf32> -> vector<4x1xf32>
    %12 = arith.addf %9, %11 : vector<4x1xf32>
    %c0_10 = arith.constant 0 : index
    %c0_11 = arith.constant 0 : index
    %13 = vector.load %arg4[%c0_10, %c0_11] : memref<4x1xf32, #tpu.memory_space<vmem>>, vector<4x1xf32>
    %14 = arith.addf %12, %13 : vector<4x1xf32>
    %15 = vector.broadcast %14 : vector<4x1xf32> to vector<4x256xf32>
    %16 = arith.mulf %15, %1 : vector<4x256xf32>
    %cst_12 = arith.constant dense<0.000000e+00> : vector<256xf32>
    %17 = vector.multi_reduction <add>, %16, %cst_12 [0] : vector<4x256xf32> to vector<256xf32>
    %18 = vector.shape_cast %17 : vector<256xf32> to vector<1x256xf32>
    %19 = vector.broadcast %18 : vector<1x256xf32> to vector<4x256xf32>
    %20 = arith.mulf %19, %1 : vector<4x256xf32>
    %c0_13 = arith.constant 0 : index
    %c0_14 = arith.constant 0 : index
    %c0_15 = arith.constant 0 : index
    %21 = vector.load %arg5[%c0_13, %c0_14, %c0_15] : memref<1x4x256xf32, #tpu.memory_space<vmem>>, vector<1x4x256xf32>
    %22 = vector.shape_cast %21 : vector<1x4x256xf32> to vector<4x256xf32>
    %23 = vector.shape_cast %20 : vector<4x256xf32> to vector<1x4x256xf32>
    tpu.vector_store %arg5[%c0_13, %c0_14, %c0_15], %23 {strides = array<i32>} : memref<1x4x256xf32, #tpu.memory_space<vmem>>, vector<1x4x256xf32>,
    return
  }
  func.func @transform_0(%arg0: i32) -> (i32, i32, i32) {
    %c0_i32 = arith.constant 0 : i32
    %c0_i32_0 = arith.constant 0 : i32
    %c0_i32_1 = arith.constant 0 : i32
    return %arg0, %c0_i32, %c0_i32_0 : i32, i32, i32
  }
  func.func @transform_1(%arg0: i32) -> (i32, i32) {
    %c0_i32 = arith.constant 0 : i32
    %c0_i32_0 = arith.constant 0 : i32
    %c0_i32_1 = arith.constant 0 : i32
    return %c0_i32, %c0_i32_0 : i32, i32
  }
  func.func @transform_2(%arg0: i32) -> (i32, i32) {
    %c0_i32 = arith.constant 0 : i32
    %c0_i32_0 = arith.constant 0 : i32
    %c0_i32_1 = arith.constant 0 : i32
    return %c0_i32, %c0_i32_0 : i32, i32
  }
  func.func @transform_3(%arg0: i32) -> (i32, i32) {
    %c0_i32 = arith.constant 0 : i32
    %c0_i32_0 = arith.constant 0 : i32
    %c0_i32_1 = arith.constant 0 : i32
    return %c0_i32, %c0_i32_0 : i32, i32
  }
  func.func @transform_4(%arg0: i32) -> (i32, i32, i32) {
    %c0_i32 = arith.constant 0 : i32
    %c0_i32_0 = arith.constant 0 : i32
    %c0_i32_1 = arith.constant 0 : i32
    return %arg0, %c0_i32, %c0_i32_0 : i32, i32, i32
  }
}

</mosaic_0001>

<bundles_post_ra>
// kernel: tpu_custom_call.1
= control target key start
LH: loop header
LB: loop body
LE: loop exit
PB: predicated region body
PF: predicated region fallthrough
CT: control target
= control target key end

     0   :  { %9 = vsyncpa [#allocation3], 0  ;;  %s872_s0 = inlined_call_operand.hbm [shape: f32[2,4,256], index: 0, kind: input, shape index: {}]   ;;  %s873_s1 = inlined_call_operand.vmem [shape: f32[4,4], index: 1, kind: input, shape index: {}]   ;;  %s874_s2 = inlined_call_operand.vmem [shape: f32[4,4], index: 2, kind: input, shape index: {}]   ;;  %s875_s3 = inlined_call_operand.vmem [shape: f32[4,1], index: 3, kind: input, shape index: {}]   ;;  %s876_s4 = inlined_call_operand.hbm [shape: f32[2,4,256], index: 4, kind: output, shape index: {}]  }
   0x1   :  { %11 = vsyncpa [#allocation3 + $0x1], 0 }
   0x2   :  { %12 = vsyncpa [#allocation4], 0 }
   0x3   :  { %14 = vsyncpa [#allocation4 + $0x1], 0  ;;  %s710_s15 = smov 0   ;;  %s712_s16 = smov 0  }
   0x4   :  { %s714_s17 = smov 0   ;;  %s716_s18 = smov 0  }
   0x5 LB: > { %s731_s19 = sadd.s32 4294967295, %s678_s18   ;;  %s500_s20 = sadd.s32 4294967294, %s678_s18   ;;  %s678_s18 = sphi %s716_s18, %s893_s18   ;;  %s674_s17 = sphi %s714_s17, %s892_s17   ;;  %s670_s16 = sphi %s712_s16, %s891_s16   ;;  %s666_s15 = sphi %s710_s15, %s890_s15  }
   0x6   : > { %s735_s21 = sadd.s32 1, %s678_s18   ;;  %s27_s22 = sadd.s32 1, %s674_s17 }
   0x7   : > { %s24_s23 = ssub.s32 %s678_s18, %s735_s21  ;;  %p34_p0 = scmp.ne.s32.totalorder %s674_s17, %s670_s16 }
   0x8   : > { %p25_p1 = scmp.eq.s32.totalorder %s24_s23, 0  ;;  %p35_p2 = scmp.eq.s32.totalorder %s678_s18, 0 }
   0x9   : > { %p40_p3 = scmp.ne.s32.totalorder %s670_s16, %s666_s15  ;;  %p41_p4 = scmp.eq.s32.totalorder %s731_s19, 0 }
   0xa   : > { %s747_s24 = scalar_select %p25_p1, %s674_s17, %s27_s22  }
   0xb   : > { %p749_p5 = por %p35_p2, %p34_p0  ;;  %p753_p6 = por %p41_p4, %p40_p3 }
   0xc   : > { %p127_p7 = scmp.eq.s32.totalorder %s731_s19, 1  ;;  %p133_p8 = scmp.eq.s32.totalorder %s500_s20, 1 }
   0xd   : > { %s880_s26 = scalar_select %p753_p6, 1, 0 }
   0xe   : > { %p546_p10 = scmp.lt.s32.totalorder %s678_s18, 2  ;;  %p760_p11 = por %p127_p7, %p34_p0 }
   0xf   : > { %p764_p12 = por %p133_p8, %p40_p3  ;;  %s162_s29 = sand.u32 1, %s674_s17  }
  0x10   : > { %s881_s27 = scalar_select %p760_p11, 1, 0 }
  0x11   : > { %s882_s28 = scalar_select %p764_p12, 1, 0 }
  0x12   : > { %s518_s30 = sshll.u32 %s678_s18, 7  ;;  %s503_s5 = sshll.u32 %s162_s29, 3 }
  0x13   : > { %s773_s8 = scalar_lea.hbm %s872_s0, %s518_s30  ;;  %s166_s9 = scalar_lea.vmem [#allocation2], %s503_s5 }
  0x14   : > { %s174_s10 = sshll.u32 %s166_s9, 4  ;;  %p777_p13 = pnand %p546_p10, %p749_p5  ;;  %s781_s10 = int_to_ptr.vmem [resolvable:$true] %s174_s10 }
  0x15   : > { %s163_s12 = scalar_lea.sflag [#allocation3], %s162_s29  ;;  %s586_s13 = scalar_lea.hbm %s773_s8, 128 }
  0x16   : > { %p587_p2 = scmp.ne.s32.totalorder %s773_s8, %s586_s13  ;;  %p588_p3 = pneg %p777_p13 }
  0x17   : > { %s591_s22 = scalar_lea.hbm %s872_s0, 256  ;;  %p592_p5 = scmp.lt.s32.totalorder %s773_s8, %s872_s0 }
  0x18   : > { %p589_p4 = pnand %p588_p3, %p587_p2  ;;  %p593_p8 = scmp.lt.s32.totalorder %s591_s22, %s586_s13 }
  0x1a   : > { %p590_p7 = pneg %p589_p4  ;;  %p594_p10 = por %p593_p8, %p592_p5 }
  0x1c   : > { %p595_p9 = pnand %p594_p10, %p590_p7 }
  0x1e   : > { %598 = shalt.err (!%p595_p9)
}
  0x1f   : > { %s599_s29 = scalar_lea.vmem %s781_s10, 128  ;;  %s680_s30 = smov [#allocation2]  }
  0x20   : > { %p600_p0 = scmp.ne.s32.totalorder %s781_s10, %s599_s29  ;;  %s604_s5 = sshll.u32 %s680_s30, 4  ;;  %s605_s5 = int_to_ptr.vmem [resolvable:$false] %s604_s5 }
  0x21   : > { %s606_s6 = scalar_lea.vmem %s605_s5, 256  ;;  %p607_p4 = scmp.lt.s32.totalorder %s781_s10, %s605_s5 }
  0x22   : > { %p602_p1 = pnand %p600_p0, %p588_p3  ;;  %p608_p12 = scmp.lt.s32.totalorder %s606_s6, %s599_s29 }
  0x24   : > { %p603_p2 = pneg %p602_p1  ;;  %p609_p11 = por %p608_p12, %p607_p4 }
  0x26   : > { %p610_p6 = pnand %p609_p11, %p603_p2 }
  0x28   : > { %613 = shalt.err (!%p610_p6)
}
  0x29   : > { %541 = dma.hbm_to_vmem [thread:$0]  (!%p777_p13), %s773_s8, 128, %s781_s10, %s163_s12  }
  0x2a   : > { %p884_p9 = scmp.lt.s32.totalorder %s678_s18, 3  ;;  %p885_p7 = scmp.ge.s32.totalorder %s678_s18, 1 }
  0x2c   : > { %p180_p0 = pnand %p885_p7, %p884_p9 }
  0x2d   : > { %s808_s7 = sand.u32 (!%p180_p0), 1, %s670_s16   ;;  %p886_p6 = scmp.ne.s32.totalorder (!%p180_p0), %s880_s26, 0 }
  0x2e   : > { %183 = sbr.rel (%p180_p0) target bundleno = 554 (0x22a), region = 36  ;;  %s507_s9 = sshll.u32 (!%p180_p0), %s808_s7, 3 }
  0x2f   : > { %s186_s13 = scalar_lea.sflag (!%p180_p0), [#allocation3], %s808_s7  ;;  %s189_s11 = scalar_lea.vmem (!%p180_p0), [#allocation2], %s507_s9 }
  0x33   : > { %657 = dma.done.wait (%p886_p6), %s186_s13, 128  }
  0x34   : > { %659 = vsyncadd (%p886_p6), %s186_s13, 4294967168  ;;  %vm218_vm0 = vcmask 1043456   ;;  %v214_v0 = vld [vmem:[%s189_s11] sm:$0xff]  ;;  %v681_v8 = vmov 0.0   ;;  %vm682_vm1 = vmmov 0   ;;  %vm232_vm2 = vcmask 31744  }
  0x35   : > { %v216_v1 = vcombine.high %v214_v0, %v214_v0  ;;  %v219_v2 = vsel %vm218_vm0, %v214_v0, 0.0  ;;  %v225_v4 = vsel %vm218_vm0, %v214_v0, -inf  ;;  %529 = vmatprep.subr.mxu1 %v681_v8  ;;  %524 = vmatprep.subr.mxu0 %v681_v8  ;;  %v230_v11 = vld [vmem:[%s873_s1] sm:$0xf]  ;;  %v683_v14 = vmov 0   ;;  %s519_s22 = sshll.u32 %s731_s19, 7 }
  0x36   : > { %531 = vmatprep.mubr.msk.f32.mxu1 %vm682_vm1, %v681_v8  ;;  %526 = vmatprep.mubr.msk.f32.mxu0 %vm682_vm1, %v681_v8  ;;  %v231_v12 = vld [vmem:[%s874_s2] sm:$0xf]  ;;  %s213_s23 = scalar_lea.vmem [#allocation5], %s507_s9  ;;  %s428_s5 = scalar_lea.hbm %s876_s4, %s519_s22 }
  0x37   : > { %v220_v3 = vsel %vm218_vm0, %v216_v1, 0.0  ;;  %v226_v5 = vsel %vm218_vm0, %v216_v1, -inf  ;;  %583 = vset.pattern.permute.xlu1 %v683_v14  ;;  %584 = vset.pattern.permute.xlu0 %v683_v14  ;;  %v385_v18 = vld [vmem:[%s875_s3] sm:$0xf]  ;;  %s430_s25 = sshll.u32 %s213_s23, 4  ;;  %s416_s6 = scalar_lea.sflag [#allocation4], %s808_s7  ;;  %s431_s25 = int_to_ptr.vmem [resolvable:$true] %s430_s25 }
  0x38   : > { %v221_v6 = vadd.f32 %v220_v3, %v219_v2  ;;  %v227_v7 = vmax.f32 %v225_v4, %v226_v5  ;;  %s614_s13 = scalar_lea.vmem %s431_s25, 128  ;;  %p887_p12 = scmp.ne.s32.totalorder %s881_s27, 0 }
  0x39   : > { %p615_p11 = scmp.ne.s32.totalorder %s431_s25, %s614_s13  ;;  %s684_s11 = smov [#allocation5]  }
  0x3a   : > { %222 = vadd.xlane.f32.xlu0 %v221_v6  ;;  %s618_s19 = sshll.u32 %s684_s11, 4  ;;  %s619_s19 = int_to_ptr.vmem [resolvable:$false] %s618_s19 }
  0x3b   : > { %p616_p13 = pnand %p615_p11, %p887_p12  ;;  %s620_s9 = scalar_lea.vmem %s619_s19, 256 }
  0x3c   : > { %p621_p3 = scmp.lt.s32.totalorder %s431_s25, %s619_s19  ;;  %p622_p5 = scmp.lt.s32.totalorder %s620_s9, %s614_s13 }
  0x3d   : > { %p617_p1 = pneg %p616_p13 }
  0x3e   : > { %228 = vmax.xlane.f32.xlu0 %v227_v7  ;;  %p623_p8 = por %p622_p5, %p621_p3 }
  0x40   : > { %p624_p10 = pnand %p623_p8, %p617_p1 }
  0xc3   : > { %v223_v9 = vpop.xlane.xlu0 %222 }
  0xc4   : > { %v224_v10 = vmul.f32 0.00390625, %v223_v9 }
  0xc6   : > { %530 = vmatpush3.msk.msra.mxu1 %vm218_vm0, %v224_v10 }
  0xc7   : > { %532 = vmatmul.mubr.msk.f32.vlgmr.msra.gmra.mxu1 %vm232_vm2, %v230_v11  ;;  %v229_v13 = vpop.xlane.xlu0 %228 }
  0xc8   : > { %525 = vmatpush3.msk.msra.mxu0 %vm218_vm0, %v229_v13 }
  0xc9   : > { %527 = vmatmul.mubr.msk.f32.vlgmr.msra.gmra.mxu0 %vm232_vm2, %v231_v12 }
 0x187   : > { %v381_v15 = vpop.f32.mrf.mxu1 }
 0x189   : > { %v305_v16 = vpop.f32.mrf.mxu0  ;;  %v533_v17 = vpop.f32.mrf.mxu1 }
 0x18a   : > { %v382_v19 = vadd.f32 %v381_v15, %v305_v16 }
 0x18b   : > { %v528_v20 = vpop.f32.mrf.mxu0 }
 0x18c   : > { %v386_v21 = vadd.f32 %v385_v18, %v382_v19 }
 0x18e   : > { %389 = vperm.xlu1 %583, %v386_v21  }
 0x209   : > { %v390_v22 = vpop.permute.xlu1 %389 }
 0x20a   : > { %v392_v23 = vmul.f32 %v390_v22, %v214_v0  ;;  %v393_v24 = vmul.f32 %v390_v22, %v216_v1 }
 0x20c   : > { %v394_v25 = vsel %vm218_vm0, %v392_v23, 0.0  ;;  %v401_v26 = vsel %vm218_vm0, %v393_v24, 0.0 }
 0x20d   : > { %v395_v27 = vrot.slane %v394_v25, 4  ;;  %v402_v28 = vrot.slane %v401_v26, 4 }
 0x20f   : > { %v396_v29 = vadd.f32 %v395_v27, %v394_v25  ;;  %v403_v30 = vadd.f32 %v402_v28, %v401_v26 }
 0x211   : > { %v397_v31 = vrot.slane %v396_v29, 2  ;;  %v404_v32 = vrot.slane %v403_v30, 2 }
 0x213   : > { %v398_v33 = vadd.f32 %v397_v31, %v396_v29  ;;  %v405_v34 = vadd.f32 %v404_v32, %v403_v30 }
 0x215   : > { %v399_v35 = vrot.slane %v398_v33, 1  ;;  %v406_v36 = vrot.slane %v405_v34, 1 }
 0x217   : > { %v400_v37 = vadd.f32 %v399_v35, %v398_v33  ;;  %v407_v38 = vadd.f32 %v406_v36, %v405_v34 }
 0x219   : > { %v408_v39 = vmul.f32 %v400_v37, %v214_v0  ;;  %v409_v40 = vmul.f32 %v407_v38, %v216_v1 }
 0x21b   : > { %v412_v41 = vcombine.low %v408_v39, %v409_v40 }
 0x21d   : > { %414 = vst [vmem:[%s213_s23] sm:$0xff] %v412_v41 }
 0x21e   : > { %627 = shalt.err (!%p624_p10)
}
 0x21f   : > { %s628_s26 = scalar_lea.hbm %s428_s5, 128  ;;  %s632_s10 = scalar_lea.hbm %s876_s4, 256 }
 0x220   : > { %p629_p2 = scmp.ne.s32.totalorder %s428_s5, %s628_s26  ;;  %p633_p7 = scmp.lt.s32.totalorder %s428_s5, %s876_s4 }
 0x221   : > { %p634_p0 = scmp.lt.s32.totalorder %s632_s10, %s628_s26 }
 0x222   : > { %p630_p4 = pnand %p629_p2, %p887_p12 }
 0x223   : > { %p635_p6 = por %p634_p0, %p633_p7 }
 0x224   : > { %p631_p9 = pneg %p630_p4 }
 0x226   : > { %p636_p11 = pnand %p635_p6, %p631_p9 }
 0x228   : > { %639 = shalt.err (!%p636_p11)
}
 0x229   : > { %536 = dma.vmem_to_hbm [thread:$0]  (%p887_p12), %s431_s25, 128, %s428_s5, %s416_s6  }
 0x22a PF: > { %s442_s20 = sand.u32 1, %s666_s15   ;;  %p888_p13 = scmp.ne.s32.totalorder %s882_s28, 0 }
 0x22b   : > { %p889_p1 = scmp.ge.s32.totalorder %s678_s18, 2  ;;  %s443_s22 = scalar_lea.sflag [#allocation4], %s442_s20 }
 0x22d   : > { %p543_p3 = pnand %p889_p1, %p888_p13 }
 0x22f   : > { %p544_p5 = pneg %p543_p3 }
 0x231   : > { %661 = dma.done.wait (%p544_p5), %s443_s22, 128  }
 0x232   : > { %663 = vsyncadd (%p544_p5), %s443_s22, 4294967168  ;;  %p17_p8 = scmp.ge.s32.totalorder %s735_s21, 4   ;;  %s890_s15 = smov %s670_s16 }
 0x233   : > { %s891_s16 = smov %s674_s17  ;;  %s892_s17 = smov %s747_s24 }
 0x234   : > { %s893_s18 = smov %s735_s21  ;;  %19 = sbr.rel (!%p17_p8) target bundleno = 5 (0x5), region = 81 }
 0x239   :  { %448 = vsyncpa [#allocation3], 1 }
 0x23a   :  { %450 = vsyncpa [#allocation3 + $0x1], 1 }
 0x23b   :  { %451 = vsyncpa [#allocation4], 1 }
 0x23c   :  { %453 = vsyncpa [#allocation4 + $0x1], 1 }

</bundles_post_ra>
